<compile_context>
chip_gen: v7x
topology: tpu7x:2x2x1
jax: 0.10.0
libtpu: 0.0.40
codegen_flags: <defaults>
</compile_context>

<pallas_src>
import functools

import jax
import jax.numpy as jnp
from jax.experimental import pallas as pl
from jax.experimental.pallas import tpu as pltpu

N_STUDENT = 38          # student classes (cols 0:38); teacher = cols 38:76
TILE_B_MAX = 1024       # batch rows per grid step (multiple of 8)


def _softplus(z):
    # numerically stable softplus: log(1 + exp(z))
    return jnp.maximum(z, 0.0) + jnp.log1p(jnp.exp(-jnp.abs(z)))


def custom_loss_kernel(logits_ref, labels_ref, o_ref, acc_ref, *,
                       batch, tile_b, inv_scale):
    i = pl.program_id(0)

    @pl.when(i == 0)
    def _init():
        acc_ref[...] = jnp.zeros_like(acc_ref)

    z = logits_ref[...].astype(jnp.float32)        # [tile_b, 76]
    y = labels_ref[...].astype(jnp.float32)        # [tile_b, 38]
    x = z[:, :N_STUDENT]                           # student logits
    t = z[:, N_STUDENT:2 * N_STUDENT]              # teacher logits

    sp_x = _softplus(x)                            # 1 exp + 1 log1p
    sp_t = _softplus(t)                            # 1 exp + 1 log1p
    q = jnp.exp(t - sp_t)                          # sigmoid(t): 1 exp, reuses sp_t

    bce_elem = sp_x - x * y                        # BCEWithLogits, per element
    kl_elem = q * (t - x) + sp_x - sp_t            # binary KL, per element
    contrib = bce_elem + 0.5 * kl_elem             # [tile_b, 38]

    # Mask rows beyond the true batch (only the last tile can be padded;
    # condition is static, so this code only exists when needed).
    if batch % tile_b != 0:
        row = i * tile_b + jax.lax.broadcasted_iota(jnp.int32, contrib.shape, 0)
        contrib = jnp.where(row < batch, contrib, 0.0)

    acc_ref[...] += jnp.sum(contrib, keepdims=True)

    @pl.when(i == pl.num_programs(0) - 1)
    def _finalize():
        o_ref[...] = acc_ref[...] * inv_scale


def custom_loss(logits, labels, *, tile_b=TILE_B_MAX):
    """Pallas equivalent of CustomLoss.forward(logits, labels, should_print=False)."""
    B, F = logits.shape
    assert F == 2 * N_STUDENT, "expected [B, 76] logits (38 student + 38 teacher)"
    assert labels.shape == (B, N_STUDENT)

    if B <= tile_b:
        tile_b = B                  # single tile: block == full array dims
    else:
        assert tile_b % 8 == 0      # (8,128) sublane constraint for partial tiles

    num_tiles = pl.cdiv(B, tile_b)
    inv_scale = 1.0 / (B * N_STUDENT)

    kernel = functools.partial(custom_loss_kernel, batch=B, tile_b=tile_b,
                               inv_scale=inv_scale)

    out = pl.pallas_call(
        kernel,
        out_shape=jax.ShapeDtypeStruct((1, 1), jnp.float32),
        grid_spec=pltpu.PrefetchScalarGridSpec(
            num_scalar_prefetch=0,
            grid=(num_tiles,),
            in_specs=[
                pl.BlockSpec((tile_b, 2 * N_STUDENT), lambda i: (i, 0)),
                pl.BlockSpec((tile_b, N_STUDENT), lambda i: (i, 0)),
            ],
            out_specs=pl.BlockSpec((1, 1), lambda i: (0, 0)),
            scratch_shapes=[pltpu.VMEM((1, 1), jnp.float32)],
        ),
        compiler_params=pltpu.CompilerParams(
            dimension_semantics=("arbitrary",),   # reduction over batch tiles
        ),
    )(logits, labels)
    return out[0, 0]


def _reference(logits, labels):
    # Pure-JAX mirror of the PyTorch forward (for self-check).
    x = logits[:, :N_STUDENT].astype(jnp.float32)
    t = logits[:, N_STUDENT:2 * N_STUDENT].astype(jnp.float32)
    y = labels.astype(jnp.float32)
    B, C = x.shape
    bce = jnp.mean(jnp.maximum(x, 0.0) - x * y + jnp.log1p(jnp.exp(-jnp.abs(x))))
    p = jax.nn.sigmoid(x)
    q = jax.nn.sigmoid(t)
    kl = q * (jnp.log(q) - jnp.log(p)) + (1.0 - q) * (jnp.log(1.0 - q) - jnp.log(1.0 - p))
    return bce + jnp.sum(kl) / (2.0 * B * C)


if __name__ == "__main__":
    key = jax.random.PRNGKey(0)
    k1, k2, k3, k4 = jax.random.split(key, 4)

    # Small case matching the module: B=2, logits [B, 76], binary labels [B, 38].
    B = 2
    logits = jax.random.normal(k1, (B, 2 * N_STUDENT), dtype=jnp.float32)
    labels = jax.random.bernoulli(k2, 0.5, (B, N_STUDENT)).astype(jnp.float32)
    loss = custom_loss(logits, labels)
    jax.block_until_ready(loss)
    ref = _reference(logits, labels)
    assert jnp.allclose(loss, ref, rtol=1e-5, atol=1e-5), (loss, ref)

    # Exercise the tiled / masked path (multi-tile grid with a partial last tile).
    B2 = 20
    logits2 = jax.random.normal(k3, (B2, 2 * N_STUDENT), dtype=jnp.float32)
    labels2 = jax.random.bernoulli(k4, 0.5, (B2, N_STUDENT)).astype(jnp.float32)
    loss2 = custom_loss(logits2, labels2, tile_b=8)
    jax.block_until_ready(loss2)
    ref2 = _reference(logits2, labels2)
    assert jnp.allclose(loss2, ref2, rtol=1e-5, atol=1e-5), (loss2, ref2)

    # TODO(synk): should_print branch and get_loss() stored (teacher_loss,
    # student_loss) are host-side Python state in the PyTorch module; not
    # represented in the kernel (only the returned scalar loss is).
    print("KERNEL_OK")
</pallas_src>

<mosaic_0001>
module attributes {stable_mosaic.version = 11 : i64} {
  func.func @custom_loss_kernel(%arg0: i32, %arg1: memref<2x76xf32, #tpu.memory_space<vmem>>, %arg2: memref<2x38xf32, #tpu.memory_space<vmem>>, %arg3: memref<1x1xf32, #tpu.memory_space<vmem>>, %arg4: memref<1x1xf32, #tpu.memory_space<vmem>>) attributes {dimension_semantics = [#tpu.dimension_semantics<arbitrary>], iteration_bounds = array<i64: 1>, scalar_prefetch = 0 : i64, scratch_operands = 1 : i64, tpu.core_type = #tpu.core_type<tc>, window_params = [{transform_indices = @transform_0, window_bounds = array<i64: 2, 76>}, {transform_indices = @transform_1, window_bounds = array<i64: 2, 38>}, {pipeline_mode = #tpu.pipeline_mode<synchronous>, transform_indices = @transform_2, window_bounds = array<i64: 1, 1>}]} {
    %c0_i32 = arith.constant 0 : i32
    %0 = arith.cmpi eq, %arg0, %c0_i32 : i32
    %1 = arith.extui %0 : i1 to i32
    %c0_i32_0 = arith.constant 0 : i32
    %2 = arith.cmpi ne, %1, %c0_i32_0 : i32
    scf.if %2 {
      %cst_15 = arith.constant 0.000000e+00 : f32
      %45 = vector.broadcast %cst_15 : f32 to vector<1x1xf32>
      %c0_16 = arith.constant 0 : index
      %c0_17 = arith.constant 0 : index
      %46 = vector.load %arg4[%c0_16, %c0_17] : memref<1x1xf32, #tpu.memory_space<vmem>>, vector<1x1xf32>
      tpu.vector_store %arg4[%c0_16, %c0_17], %45 {strides = array<i32>} : memref<1x1xf32, #tpu.memory_space<vmem>>, vector<1x1xf32>,
    } else {
    }
    %c0 = arith.constant 0 : index
    %c0_1 = arith.constant 0 : index
    %3 = vector.load %arg1[%c0, %c0_1] : memref<2x76xf32, #tpu.memory_space<vmem>>, vector<2x76xf32>
    %c0_2 = arith.constant 0 : index
    %c0_3 = arith.constant 0 : index
    %4 = vector.load %arg2[%c0_2, %c0_3] : memref<2x38xf32, #tpu.memory_space<vmem>>, vector<2x38xf32>
    %5 = vector.extract_strided_slice %3 {offsets = [0, 0], sizes = [2, 38], strides = [1, 1]} : vector<2x76xf32> to vector<2x38xf32>
    %6 = vector.extract_strided_slice %3 {offsets = [0, 38], sizes = [2, 38], strides = [1, 1]} : vector<2x76xf32> to vector<2x38xf32>
    %cst = arith.constant 0.000000e+00 : f32
    %7 = vector.broadcast %cst : f32 to vector<2x38xf32>
    %8 = arith.maximumf %5, %7 : vector<2x38xf32>
    %9 = math.absf %5 : vector<2x38xf32>
    %cst_4 = arith.constant 0.000000e+00 : f32
    %10 = vector.broadcast %cst_4 : f32 to vector<2x38xf32>
    %11 = arith.subf %10, %9 : vector<2x38xf32>
    %12 = math.exp %11 : vector<2x38xf32>
    %13 = math.log1p %12 : vector<2x38xf32>
    %14 = arith.addf %8, %13 : vector<2x38xf32>
    %cst_5 = arith.constant 0.000000e+00 : f32
    %15 = vector.broadcast %cst_5 : f32 to vector<2x38xf32>
    %16 = arith.maximumf %6, %15 : vector<2x38xf32>
    %17 = math.absf %6 : vector<2x38xf32>
    %cst_6 = arith.constant 0.000000e+00 : f32
    %18 = vector.broadcast %cst_6 : f32 to vector<2x38xf32>
    %19 = arith.subf %18, %17 : vector<2x38xf32>
    %20 = math.exp %19 : vector<2x38xf32>
    %21 = math.log1p %20 : vector<2x38xf32>
    %22 = arith.addf %16, %21 : vector<2x38xf32>
    %23 = arith.subf %6, %22 : vector<2x38xf32>
    %24 = math.exp %23 : vector<2x38xf32>
    %25 = arith.mulf %5, %4 : vector<2x38xf32>
    %26 = arith.subf %14, %25 : vector<2x38xf32>
    %27 = arith.subf %6, %5 : vector<2x38xf32>
    %28 = arith.mulf %24, %27 : vector<2x38xf32>
    %29 = arith.addf %28, %14 : vector<2x38xf32>
    %30 = arith.subf %29, %22 : vector<2x38xf32>
    %cst_7 = arith.constant 5.000000e-01 : f32
    %31 = vector.broadcast %cst_7 : f32 to vector<2x38xf32>
    %32 = arith.mulf %31, %30 : vector<2x38xf32>
    %33 = arith.addf %26, %32 : vector<2x38xf32>
    %c0_8 = arith.constant 0 : index
    %c0_9 = arith.constant 0 : index
    %34 = vector.load %arg4[%c0_8, %c0_9] : memref<1x1xf32, #tpu.memory_space<vmem>>, vector<1x1xf32>
    %35 = vector.shape_cast %33 : vector<2x38xf32> to vector<1x2x38xf32>
    %cst_10 = arith.constant dense<0.000000e+00> : vector<1xf32>
    %36 = vector.multi_reduction <add>, %35, %cst_10 [1, 2] : vector<1x2x38xf32> to vector<1xf32>
    %37 = vector.shape_cast %36 : vector<1xf32> to vector<1x1x1xf32>
    %38 = vector.extract %37[0, 0, 0] : f32 from vector<1x1x1xf32>
    %39 = vector.broadcast %38 : f32 to vector<1x1xf32>
    %40 = arith.addf %34, %39 : vector<1x1xf32>
    %c0_11 = arith.constant 0 : index
    %c0_12 = arith.constant 0 : index
    %41 = vector.load %arg4[%c0_11, %c0_12] : memref<1x1xf32, #tpu.memory_space<vmem>>, vector<1x1xf32>
    tpu.vector_store %arg4[%c0_11, %c0_12], %40 {strides = array<i32>} : memref<1x1xf32, #tpu.memory_space<vmem>>, vector<1x1xf32>,
    %c0_i32_13 = arith.constant 0 : i32
    %42 = arith.cmpi eq, %arg0, %c0_i32_13 : i32
    %43 = arith.extui %42 : i1 to i32
    %c0_i32_14 = arith.constant 0 : i32
    %44 = arith.cmpi ne, %43, %c0_i32_14 : i32
    scf.if %44 {
      %c0_15 = arith.constant 0 : index
      %c0_16 = arith.constant 0 : index
      %45 = vector.load %arg4[%c0_15, %c0_16] : memref<1x1xf32, #tpu.memory_space<vmem>>, vector<1x1xf32>
      %cst_17 = arith.constant 0.0131578948 : f32
      %46 = vector.broadcast %cst_17 : f32 to vector<1x1xf32>
      %47 = arith.mulf %45, %46 : vector<1x1xf32>
      %c0_18 = arith.constant 0 : index
      %c0_19 = arith.constant 0 : index
      %48 = vector.load %arg3[%c0_18, %c0_19] : memref<1x1xf32, #tpu.memory_space<vmem>>, vector<1x1xf32>
      tpu.vector_store %arg3[%c0_18, %c0_19], %47 {strides = array<i32>} : memref<1x1xf32, #tpu.memory_space<vmem>>, vector<1x1xf32>,
    } else {
    }
    return
  }
  func.func @transform_0(%arg0: i32) -> (i32, i32) {
    %c0_i32 = arith.constant 0 : i32
    %c0_i32_0 = arith.constant 0 : i32
    return %arg0, %c0_i32 : i32, i32
  }
  func.func @transform_1(%arg0: i32) -> (i32, i32) {
    %c0_i32 = arith.constant 0 : i32
    %c0_i32_0 = arith.constant 0 : i32
    return %arg0, %c0_i32 : i32, i32
  }
  func.func @transform_2(%arg0: i32) -> (i32, i32) {
    %c0_i32 = arith.constant 0 : i32
    %c0_i32_0 = arith.constant 0 : i32
    %c0_i32_1 = arith.constant 0 : i32
    return %c0_i32, %c0_i32_0 : i32, i32
  }
}

</mosaic_0001>

<bundles_post_ra>
// kernel: tpu_custom_call.1
= control target key start
LH: loop header
LB: loop body
LE: loop exit
PB: predicated region body
PF: predicated region fallthrough
CT: control target
= control target key end

     0   :  { %7 = vsyncpa [#allocation4], 0  ;;  %s218_s0 = inlined_call_operand.hbm [shape: f32[2,76], index: 0, kind: input, shape index: {}]   ;;  %s219_s1 = inlined_call_operand.vmem [shape: f32[2,38], index: 1, kind: input, shape index: {}]   ;;  %s220_s2 = inlined_call_operand.hbm [shape: f32[1,1], index: 2, kind: output, shape index: {}]  }
   0x1   :  { %8 = vsyncpa [#allocation5], 0  ;;  %s168_s9 = smov [#allocation3]   ;;  %s120_s13 = scalar_lea.hbm %s218_s0, 32 }
   0x2   :  { %s15_s10 = sshll.u32 %s168_s9, 4  ;;  %p121_p0 = scmp.ne.s32.totalorder %s218_s0, %s120_s13  ;;  %s16_s10 = int_to_ptr.vmem [resolvable:$true] %s15_s10 }
   0x3   :  { %p124_p1 = scmp.lt.u32.totalorder %s120_s13, %s218_s0 }
   0x5   :  { %p126_p2 = pnand %p124_p1, %p121_p0 }
   0x7   :  { %129 = shalt.err (!%p126_p2)
}
   0x8   :  { %s130_s18 = scalar_lea.vmem %s16_s10, 32  ;;  %p135_p4 = scmp.lt.s32.totalorder %s16_s10, %s16_s10 }
   0x9   :  { %p131_p3 = scmp.ne.s32.totalorder %s16_s10, %s130_s18  ;;  %p136_p5 = scmp.lt.s32.totalorder %s130_s18, %s130_s18 }
   0xb   :  { %p137_p6 = por %p136_p5, %p135_p4 }
   0xd   :  { %p138_p7 = pnand %p137_p6, %p131_p3 }
   0xf   :  { %141 = shalt.err (!%p138_p7)
}
  0x10   :  { %18 = dma.hbm_to_vmem [thread:$0]  %s218_s0, 32, %s16_s10, [#allocation4]  }
  0x11   :  { %164 = dma.done.wait [#allocation4], 32  }
  0x12   :  { %165 = vsyncadd [#allocation4], 4294967264  ;;  %v30_v0 = vld [vmem:[#allocation3] sm:$0x3]  ;;  %s169_s21 = smov 38   ;;  %s170_s0 = smov 90  }
  0x13   :  { %53 = vrot.lane.b32.xlu0 %v30_v0, %s169_s21  ;;  %v33_v1 = vand.u32 2147483647, %v30_v0  ;;  %v32_v11 = vmax.f32 %v30_v0, 0.0  ;;  %v31_v25 = vld [vmem:[%s219_s1] sm:$0x3]  ;;  %vm71_vm1 = vcmask 304128  }
  0x14   :  { %v50_v26 = vmul.f32 %v31_v25, %v30_v0  ;;  %vm28_vm2 = vcmask 0   ;;  %v171_v31 = vmov 0.0   ;;  %s172_s24 = smov [#allocation6]  }
  0x15   :  { %v34_v2 = vsub.f32 0.0, %v33_v1  ;;  %29 = vst.msk [vmem:[#allocation2] sm:$0x1] %vm28_vm2, %v171_v31  ;;  %s98_s25 = sshll.u32 %s172_s24, 4  ;;  %s99_s25 = int_to_ptr.vmem [resolvable:$true] %s98_s25 }
  0x16   :  { %s142_s26 = scalar_lea.vmem %s99_s25, 16  ;;  %s146_s27 = scalar_lea.vmem %s99_s25, 32 }
  0x17   :  { %v35_v3 = vmul.f32 1.442695, %v34_v2  ;;  %p143_p8 = scmp.ne.s32.totalorder %s99_s25, %s142_s26  ;;  %p147_p9 = scmp.lt.s32.totalorder %s99_s25, %s99_s25 }
  0x18   :  { %p148_p10 = scmp.lt.s32.totalorder %s146_s27, %s142_s26 }
  0x19   :  { %114 = vpow2.f32 %v35_v3 }
  0x1a   :  { %p149_p11 = por %p148_p10, %p147_p9 }
  0x1c   :  { %v70_v39 = vld [vmem:[#allocation2] sm:$0x1]  ;;  %p150_p12 = pnand %p149_p11, %p143_p8 }
  0x23   :  { %v115_v4 = vpop.eup %114 }
  0x24   :  { %v37_v5 = vadd.f32 1.0, %v115_v4  ;;  %v40_v6 = vmul.f32 -0.5, %v115_v4  ;;  %v43_v8 = vand.u32 2147483647, %v115_v4 }
  0x26   :  { %116 = vlog2.f32 %v37_v5  ;;  %v41_v7 = vadd.f32 1.0, %v40_v6  ;;  %vm44_vm0 = vcmp.lt.f32.partialorder %v43_v8, 0.0004427343 }
  0x28   :  { %v42_v9 = vmul.f32 %v115_v4, %v41_v7 }
  0x30   :  { %v117_v10 = vpop.eup %116 }
  0x31   :  { %v39_v12 = vmul.f32 0.6931472, %v117_v10 }
  0x33   :  { %v45_v13 = vsel %vm44_vm0, %v42_v9, %v39_v12 }
  0x34   :  { %v46_v14 = vadd.f32 %v45_v13, %v32_v11 }
  0x36   :  { %59 = vrot.lane.b32.xlu0 %v46_v14, %s169_s21  ;;  %v47_v15 = vsub.f32 %v30_v0, %v46_v14  ;;  %v51_v27 = vsub.f32 %v46_v14, %v50_v26 }
  0x38   :  { %v48_v16 = vmul.f32 1.442695, %v47_v15 }
  0x3a   :  { %118 = vpow2.f32 %v48_v16 }
  0x44   :  { %v119_v19 = vpop.eup %118 }
  0x85   :  { %v54_v17 = vpop.permute.xlu0 %53 }
  0x86   :  { %v56_v18 = vsub.f32 %v30_v0, %v54_v17 }
  0x88   :  { %v57_v20 = vmul.f32 %v119_v19, %v56_v18 }
  0xa8   :  { %v60_v21 = vpop.permute.xlu0 %59 }
  0xa9   :  { %v62_v22 = vadd.f32 %v60_v21, %v57_v20 }
  0xab   :  { %v63_v23 = vsub.f32 %v62_v22, %v46_v14 }
  0xad   :  { %v64_v24 = vmul.f32 0.5, %v63_v23 }
  0xaf   :  { %66 = vrot.lane.b32.xlu1 %v64_v24, %s170_s0 }
 0x121   :  { %v67_v28 = vpop.permute.xlu1 %66 }
 0x122   :  { %v69_v29 = vadd.f32 %v67_v28, %v51_v27 }
 0x124   :  { %v72_v30 = vsel %vm71_vm1, %v69_v29, 0.0 }
 0x125   :  { %73 = vadd.xlane.f32.xlu1 %v72_v30 }
 0x1b2   :  { %v74_v32 = vpop.xlane.xlu1 %73 }
 0x1b3   :  { %v75_v33 = vrot.slane %v74_v32, 4 }
 0x1b5   :  { %v76_v34 = vadd.f32 %v75_v33, %v74_v32 }
 0x1b7   :  { %v77_v35 = vrot.slane %v76_v34, 2 }
 0x1b9   :  { %v78_v36 = vadd.f32 %v77_v35, %v76_v34 }
 0x1bb   :  { %v79_v37 = vrot.slane %v78_v36, 1 }
 0x1bd   :  { %v80_v38 = vadd.f32 %v79_v37, %v78_v36 }
 0x1bf   :  { %107 = vpush %v80_v38 }
 0x1f0   :  { %s108_s1 = spop %107 }
 0x1f1   :  { %v82_v40 = vstv %s108_s1 }
 0x1f2   :  { %v83_v41 = vadd.f32 %v82_v40, %v70_v39 }
 0x1f4   :  { %85 = vst.msk [vmem:[#allocation2] sm:$0x1] %vm28_vm2, %v83_v41 }
 0x1fb   :  { %v89_v42 = vld [vmem:[#allocation2] sm:$0x1] }
 0x1fc   :  { %v90_v43 = vmul.f32 0.013157895, %v89_v42 }
 0x1fe   :  { %91 = vst.msk [vmem:[#allocation6] sm:$0x1] %vm28_vm2, %v90_v43 }
 0x1ff   :  { %153 = shalt.err (!%p150_p12)
}
 0x200   :  { %s154_s30 = scalar_lea.hbm %s220_s2, 16 }
 0x201   :  { %p155_p13 = scmp.ne.s32.totalorder %s220_s2, %s154_s30  ;;  %p158_p0 = scmp.lt.u32.totalorder %s154_s30, %s220_s2 }
 0x203   :  { %p160_p1 = pnand %p158_p0, %p155_p13 }
 0x205   :  { %163 = shalt.err (!%p160_p1)
}
 0x206   :  { %101 = dma.vmem_to_hbm [thread:$0]  %s99_s25, 16, %s220_s2, [#allocation5]  }
 0x207   :  { %166 = dma.done.wait [#allocation5], 16  }
 0x208   :  { %167 = vsyncadd [#allocation5], 4294967280 }
 0x209   :  { %105 = vsyncpa [#allocation4], 1 }
 0x20a   :  { %106 = vsyncpa [#allocation5], 1 }

</bundles_post_ra>
